<compile_context>
chip_gen: v5e
topology: v5e:2x2
jax: 0.10.0
libtpu: 0.0.40
codegen_flags: <defaults>
</compile_context>

<pallas_src>
import jax
import jax.numpy as jnp
from jax.experimental import pallas as pl
from jax.experimental.pallas import tpu as pltpu

NUM_SPLINES = 10


def _round_up(n, m):
    return (n + m - 1) // m * m


def kan_kernel(x_ref, wh_ref, bh_ref, wo_ref, bo_ref,
               knots_ref, slope_ref, icpt_ref, o_ref):
    # ---- hidden linear: (TB, IN) @ (IN, HID_P) + b_h ----
    h = jnp.dot(x_ref[...], wh_ref[...], preferred_element_type=jnp.float32)
    h = h + bh_ref[...]

    # ---- SplineActivation as a per-segment affine cascade ----
    # Segment j (1..NUM_SPLINES-1) has s = slope[j-1]*h + icpt[j-1].
    # Start in segment 1; each "knots[j] < h" comparison advances to segment
    # j+1.  Because knots are sorted, the last true comparison wins, which
    # reproduces torch.bucketize(x, knots, right=False) with the index clamped
    # into [1, NUM_SPLINES-1].
    # TODO(synk): out-of-range bucketize indices are clamped (linear
    # extrapolation with the first/last segment) instead of erroring like
    # PyTorch index_select would on indices -1 / NUM_SPLINES.
    slope = jnp.full(h.shape, slope_ref[0], jnp.float32)
    icpt = jnp.full(h.shape, icpt_ref[0], jnp.float32)
    for j in range(1, NUM_SPLINES - 1):          # j = 1..8
        m = knots_ref[j] < h
        slope = jnp.where(m, slope_ref[j], slope)
        icpt = jnp.where(m, icpt_ref[j], icpt)
    s = slope * h + icpt

    # ---- ReLU ----
    a = jnp.maximum(s, 0.0)

    # ---- output linear: (TB, HID_P) @ (HID_P, OUT_P) + b_o ----
    out = jnp.dot(a, wo_ref[...], preferred_element_type=jnp.float32)
    o_ref[...] = (out + bo_ref[...]).astype(o_ref.dtype)


def kan_forward(x, wh_t, bh, wo_t, bo, knots, spline_w, *, block_b=1024):
    B, IN = x.shape
    HID = wh_t.shape[1]
    OUT = wo_t.shape[1]

    # Lane-dense feature dims; batch tile rounded to a sublane multiple.
    HID_P = _round_up(HID, 128)
    OUT_P = _round_up(OUT, 128)
    TB = min(block_b, _round_up(B, 8))
    Bp = _round_up(B, TB)

    f32 = jnp.float32
    xp = jnp.pad(x.astype(f32), ((0, Bp - B), (0, 0)))
    wh_p = jnp.pad(wh_t.astype(f32), ((0, 0), (0, HID_P - HID)))
    bh_p = jnp.pad(bh.astype(f32), (0, HID_P - HID)).reshape(1, HID_P)
    wo_p = jnp.pad(wo_t.astype(f32), ((0, HID_P - HID), (0, OUT_P - OUT)))
    bo_p = jnp.pad(bo.astype(f32), (0, OUT_P - OUT)).reshape(1, OUT_P)

    # Per-segment affine coefficients for segments 1..NUM_SPLINES-1:
    #   s = w[j-1]*(h - k[j-1]) + w[j]*(k[j] - h)
    #     = (w[j-1]-w[j]) * h + (w[j]*k[j] - w[j-1]*k[j-1])
    knots_f = knots.astype(f32)
    w_f = spline_w.astype(f32)
    seg = jnp.arange(1, NUM_SPLINES)
    slope = w_f[seg - 1] - w_f[seg]
    icpt = w_f[seg] * knots_f[seg] - w_f[seg - 1] * knots_f[seg - 1]

    smem = pl.BlockSpec(memory_space=pltpu.MemorySpace.SMEM)

    out = pl.pallas_call(
        kan_kernel,
        out_shape=jax.ShapeDtypeStruct((Bp, OUT_P), jnp.float32),
        grid=(Bp // TB,),
        in_specs=[
            pl.BlockSpec((TB, IN), lambda i: (i, 0)),          # x (blocked over batch)
            pl.BlockSpec((IN, HID_P), lambda i: (0, 0)),       # W_h^T (resident)
            pl.BlockSpec((1, HID_P), lambda i: (0, 0)),        # b_h
            pl.BlockSpec((HID_P, OUT_P), lambda i: (0, 0)),    # W_o^T (resident)
            pl.BlockSpec((1, OUT_P), lambda i: (0, 0)),        # b_o
            smem,                                              # knots (1-D SMEM)
            smem,                                              # slope (1-D SMEM)
            smem,                                              # intercept (1-D SMEM)
        ],
        out_specs=pl.BlockSpec((TB, OUT_P), lambda i: (i, 0)),
        compiler_params=pltpu.CompilerParams(
            dimension_semantics=("parallel",),
            vmem_limit_bytes=64 << 20),
    )(xp, wh_p, bh_p, wo_p, bo_p, knots_f, slope, icpt)

    return out[:B, :OUT]


def kan_reference(x, wh_t, bh, wo_t, bo, knots, spline_w):
    """Pure-JAX reference with identical (clamped) gather semantics."""
    h = x @ wh_t + bh
    idx = jnp.searchsorted(knots, h.reshape(-1), side="left").reshape(h.shape)
    idx = jnp.clip(idx, 1, NUM_SPLINES - 1)
    li = idx - 1
    s = (jnp.take(spline_w, li) * (h - jnp.take(knots, li))
         + jnp.take(spline_w, idx) * (jnp.take(knots, idx) - h))
    a = jnp.maximum(s, 0.0)
    return a @ wo_t + bo


if __name__ == "__main__":
    # Small shapes consistent with the module: x is (batch, input_size).
    B, IN, HID, OUT = 8, 16, 32, 8

    key = jax.random.PRNGKey(0)
    kx, kwh, kbh, kwo, kbo, ksw = jax.random.split(key, 6)

    # Deterministic parameter init (PyTorch-Linear-style uniform bounds).
    lim_h = 1.0 / jnp.sqrt(IN)
    lim_o = 1.0 / jnp.sqrt(HID)
    x = jax.random.normal(kx, (B, IN), jnp.float32) * 0.5
    wh_t = jax.random.uniform(kwh, (IN, HID), jnp.float32, -lim_h, lim_h)   # W_h^T
    bh = jax.random.uniform(kbh, (HID,), jnp.float32, -lim_h, lim_h)
    wo_t = jax.random.uniform(kwo, (HID, OUT), jnp.float32, -lim_o, lim_o)  # W_o^T
    bo = jax.random.uniform(kbo, (OUT,), jnp.float32, -lim_o, lim_o)
    knots = jnp.linspace(-1.0, 1.0, NUM_SPLINES).astype(jnp.float32)
    spline_w = (jax.random.normal(ksw, (NUM_SPLINES,), jnp.float32) * 0.5)

    out = kan_forward(x, wh_t, bh, wo_t, bo, knots, spline_w)
    out = jax.block_until_ready(out)

    ref = kan_reference(x, wh_t, bh, wo_t, bo, knots, spline_w)
    assert out.shape == (B, OUT)
    assert jnp.allclose(out, ref, atol=1e-5, rtol=1e-5), "mismatch vs reference"

    print("KERNEL_OK")
</pallas_src>

<mosaic_0001>
module attributes {stable_mosaic.version = 11 : i64} {
  func.func @kan_kernel(%arg0: i32, %arg1: memref<8x16xf32, #tpu.memory_space<vmem>>, %arg2: memref<16x128xf32, #tpu.memory_space<vmem>>, %arg3: memref<1x128xf32, #tpu.memory_space<vmem>>, %arg4: memref<128x128xf32, #tpu.memory_space<vmem>>, %arg5: memref<1x128xf32, #tpu.memory_space<vmem>>, %arg6: memref<10xf32, #tpu.memory_space<smem>>, %arg7: memref<9xf32, #tpu.memory_space<smem>>, %arg8: memref<9xf32, #tpu.memory_space<smem>>, %arg9: memref<8x128xf32, #tpu.memory_space<vmem>>) attributes {dimension_semantics = [#tpu.dimension_semantics<parallel>], iteration_bounds = array<i64: 1>, scalar_prefetch = 0 : i64, scratch_operands = 0 : i64, tpu.core_type = #tpu.core_type<tc>, window_params = [{transform_indices = @transform_0, window_bounds = array<i64: 8, 16>}, {pipeline_mode = #tpu.pipeline_mode<synchronous>, transform_indices = @transform_1, window_bounds = array<i64: 16, 128>}, {pipeline_mode = #tpu.pipeline_mode<synchronous>, transform_indices = @transform_2, window_bounds = array<i64: 1, 128>}, {pipeline_mode = #tpu.pipeline_mode<synchronous>, transform_indices = @transform_3, window_bounds = array<i64: 128, 128>}, {pipeline_mode = #tpu.pipeline_mode<synchronous>, transform_indices = @transform_4, window_bounds = array<i64: 1, 128>}, {transform_indices = @transform_5, window_bounds = array<i64: 10>}, {transform_indices = @transform_6, window_bounds = array<i64: 9>}, {transform_indices = @transform_7, window_bounds = array<i64: 9>}, {transform_indices = @transform_8, window_bounds = array<i64: 8, 128>}]} {
    %c0 = arith.constant 0 : index
    %c0_0 = arith.constant 0 : index
    %0 = vector.load %arg1[%c0, %c0_0] : memref<8x16xf32, #tpu.memory_space<vmem>>, vector<8x16xf32>
    %c0_1 = arith.constant 0 : index
    %c0_2 = arith.constant 0 : index
    %1 = vector.load %arg2[%c0_1, %c0_2] : memref<16x128xf32, #tpu.memory_space<vmem>>, vector<16x128xf32>
    %cst = arith.constant dense<0.000000e+00> : vector<8x128xf32>
    %2 = tpu.matmul %0, %1, %cst {dimension_numbers = #tpu.dot_dimension_numbers<[1], [0], [0], [1], [0, 0, 1, 1], [], []>} : vector<8x16xf32>, vector<16x128xf32>, vector<8x128xf32> -> vector<8x128xf32>
    %c0_3 = arith.constant 0 : index
    %c0_4 = arith.constant 0 : index
    %3 = vector.load %arg3[%c0_3, %c0_4] : memref<1x128xf32, #tpu.memory_space<vmem>>, vector<1x128xf32>
    %4 = vector.broadcast %3 : vector<1x128xf32> to vector<8x128xf32>
    %5 = arith.addf %2, %4 : vector<8x128xf32>
    %c0_5 = arith.constant 0 : index
    %6 = memref.load %arg7[%c0_5] : memref<9xf32, #tpu.memory_space<smem>>
    %7 = vector.broadcast %6 : f32 to vector<8x128xf32>
    %c0_6 = arith.constant 0 : index
    %8 = memref.load %arg8[%c0_6] : memref<9xf32, #tpu.memory_space<smem>>
    %9 = vector.broadcast %8 : f32 to vector<8x128xf32>
    %c1 = arith.constant 1 : index
    %10 = memref.load %arg6[%c1] : memref<10xf32, #tpu.memory_space<smem>>
    %11 = vector.broadcast %10 : f32 to vector<8x128xf32>
    %12 = arith.cmpf olt, %11, %5 : vector<8x128xf32>
    %c1_7 = arith.constant 1 : index
    %13 = memref.load %arg7[%c1_7] : memref<9xf32, #tpu.memory_space<smem>>
    %14 = vector.broadcast %13 : f32 to vector<8x128xf32>
    %15 = arith.select %12, %14, %7 : vector<8x128xi1>, vector<8x128xf32>
    %c1_8 = arith.constant 1 : index
    %16 = memref.load %arg8[%c1_8] : memref<9xf32, #tpu.memory_space<smem>>
    %17 = vector.broadcast %16 : f32 to vector<8x128xf32>
    %18 = arith.select %12, %17, %9 : vector<8x128xi1>, vector<8x128xf32>
    %c2 = arith.constant 2 : index
    %19 = memref.load %arg6[%c2] : memref<10xf32, #tpu.memory_space<smem>>
    %20 = vector.broadcast %19 : f32 to vector<8x128xf32>
    %21 = arith.cmpf olt, %20, %5 : vector<8x128xf32>
    %c2_9 = arith.constant 2 : index
    %22 = memref.load %arg7[%c2_9] : memref<9xf32, #tpu.memory_space<smem>>
    %23 = vector.broadcast %22 : f32 to vector<8x128xf32>
    %24 = arith.select %21, %23, %15 : vector<8x128xi1>, vector<8x128xf32>
    %c2_10 = arith.constant 2 : index
    %25 = memref.load %arg8[%c2_10] : memref<9xf32, #tpu.memory_space<smem>>
    %26 = vector.broadcast %25 : f32 to vector<8x128xf32>
    %27 = arith.select %21, %26, %18 : vector<8x128xi1>, vector<8x128xf32>
    %c3 = arith.constant 3 : index
    %28 = memref.load %arg6[%c3] : memref<10xf32, #tpu.memory_space<smem>>
    %29 = vector.broadcast %28 : f32 to vector<8x128xf32>
    %30 = arith.cmpf olt, %29, %5 : vector<8x128xf32>
    %c3_11 = arith.constant 3 : index
    %31 = memref.load %arg7[%c3_11] : memref<9xf32, #tpu.memory_space<smem>>
    %32 = vector.broadcast %31 : f32 to vector<8x128xf32>
    %33 = arith.select %30, %32, %24 : vector<8x128xi1>, vector<8x128xf32>
    %c3_12 = arith.constant 3 : index
    %34 = memref.load %arg8[%c3_12] : memref<9xf32, #tpu.memory_space<smem>>
    %35 = vector.broadcast %34 : f32 to vector<8x128xf32>
    %36 = arith.select %30, %35, %27 : vector<8x128xi1>, vector<8x128xf32>
    %c4 = arith.constant 4 : index
    %37 = memref.load %arg6[%c4] : memref<10xf32, #tpu.memory_space<smem>>
    %38 = vector.broadcast %37 : f32 to vector<8x128xf32>
    %39 = arith.cmpf olt, %38, %5 : vector<8x128xf32>
    %c4_13 = arith.constant 4 : index
    %40 = memref.load %arg7[%c4_13] : memref<9xf32, #tpu.memory_space<smem>>
    %41 = vector.broadcast %40 : f32 to vector<8x128xf32>
    %42 = arith.select %39, %41, %33 : vector<8x128xi1>, vector<8x128xf32>
    %c4_14 = arith.constant 4 : index
    %43 = memref.load %arg8[%c4_14] : memref<9xf32, #tpu.memory_space<smem>>
    %44 = vector.broadcast %43 : f32 to vector<8x128xf32>
    %45 = arith.select %39, %44, %36 : vector<8x128xi1>, vector<8x128xf32>
    %c5 = arith.constant 5 : index
    %46 = memref.load %arg6[%c5] : memref<10xf32, #tpu.memory_space<smem>>
    %47 = vector.broadcast %46 : f32 to vector<8x128xf32>
    %48 = arith.cmpf olt, %47, %5 : vector<8x128xf32>
    %c5_15 = arith.constant 5 : index
    %49 = memref.load %arg7[%c5_15] : memref<9xf32, #tpu.memory_space<smem>>
    %50 = vector.broadcast %49 : f32 to vector<8x128xf32>
    %51 = arith.select %48, %50, %42 : vector<8x128xi1>, vector<8x128xf32>
    %c5_16 = arith.constant 5 : index
    %52 = memref.load %arg8[%c5_16] : memref<9xf32, #tpu.memory_space<smem>>
    %53 = vector.broadcast %52 : f32 to vector<8x128xf32>
    %54 = arith.select %48, %53, %45 : vector<8x128xi1>, vector<8x128xf32>
    %c6 = arith.constant 6 : index
    %55 = memref.load %arg6[%c6] : memref<10xf32, #tpu.memory_space<smem>>
    %56 = vector.broadcast %55 : f32 to vector<8x128xf32>
    %57 = arith.cmpf olt, %56, %5 : vector<8x128xf32>
    %c6_17 = arith.constant 6 : index
    %58 = memref.load %arg7[%c6_17] : memref<9xf32, #tpu.memory_space<smem>>
    %59 = vector.broadcast %58 : f32 to vector<8x128xf32>
    %60 = arith.select %57, %59, %51 : vector<8x128xi1>, vector<8x128xf32>
    %c6_18 = arith.constant 6 : index
    %61 = memref.load %arg8[%c6_18] : memref<9xf32, #tpu.memory_space<smem>>
    %62 = vector.broadcast %61 : f32 to vector<8x128xf32>
    %63 = arith.select %57, %62, %54 : vector<8x128xi1>, vector<8x128xf32>
    %c7 = arith.constant 7 : index
    %64 = memref.load %arg6[%c7] : memref<10xf32, #tpu.memory_space<smem>>
    %65 = vector.broadcast %64 : f32 to vector<8x128xf32>
    %66 = arith.cmpf olt, %65, %5 : vector<8x128xf32>
    %c7_19 = arith.constant 7 : index
    %67 = memref.load %arg7[%c7_19] : memref<9xf32, #tpu.memory_space<smem>>
    %68 = vector.broadcast %67 : f32 to vector<8x128xf32>
    %69 = arith.select %66, %68, %60 : vector<8x128xi1>, vector<8x128xf32>
    %c7_20 = arith.constant 7 : index
    %70 = memref.load %arg8[%c7_20] : memref<9xf32, #tpu.memory_space<smem>>
    %71 = vector.broadcast %70 : f32 to vector<8x128xf32>
    %72 = arith.select %66, %71, %63 : vector<8x128xi1>, vector<8x128xf32>
    %c8 = arith.constant 8 : index
    %73 = memref.load %arg6[%c8] : memref<10xf32, #tpu.memory_space<smem>>
    %74 = vector.broadcast %73 : f32 to vector<8x128xf32>
    %75 = arith.cmpf olt, %74, %5 : vector<8x128xf32>
    %c8_21 = arith.constant 8 : index
    %76 = memref.load %arg7[%c8_21] : memref<9xf32, #tpu.memory_space<smem>>
    %77 = vector.broadcast %76 : f32 to vector<8x128xf32>
    %78 = arith.select %75, %77, %69 : vector<8x128xi1>, vector<8x128xf32>
    %c8_22 = arith.constant 8 : index
    %79 = memref.load %arg8[%c8_22] : memref<9xf32, #tpu.memory_space<smem>>
    %80 = vector.broadcast %79 : f32 to vector<8x128xf32>
    %81 = arith.select %75, %80, %72 : vector<8x128xi1>, vector<8x128xf32>
    %82 = arith.mulf %78, %5 : vector<8x128xf32>
    %83 = arith.addf %82, %81 : vector<8x128xf32>
    %cst_23 = arith.constant 0.000000e+00 : f32
    %84 = vector.broadcast %cst_23 : f32 to vector<8x128xf32>
    %85 = arith.maximumf %83, %84 : vector<8x128xf32>
    %c0_24 = arith.constant 0 : index
    %c0_25 = arith.constant 0 : index
    %86 = vector.load %arg4[%c0_24, %c0_25] : memref<128x128xf32, #tpu.memory_space<vmem>>, vector<128x128xf32>
    %cst_26 = arith.constant dense<0.000000e+00> : vector<8x128xf32>
    %87 = tpu.matmul %85, %86, %cst_26 {dimension_numbers = #tpu.dot_dimension_numbers<[1], [0], [0], [1], [0, 0, 1, 1], [], []>} : vector<8x128xf32>, vector<128x128xf32>, vector<8x128xf32> -> vector<8x128xf32>
    %c0_27 = arith.constant 0 : index
    %c0_28 = arith.constant 0 : index
    %88 = vector.load %arg5[%c0_27, %c0_28] : memref<1x128xf32, #tpu.memory_space<vmem>>, vector<1x128xf32>
    %89 = vector.broadcast %88 : vector<1x128xf32> to vector<8x128xf32>
    %90 = arith.addf %87, %89 : vector<8x128xf32>
    %c0_29 = arith.constant 0 : index
    %c0_30 = arith.constant 0 : index
    %91 = vector.load %arg9[%c0_29, %c0_30] : memref<8x128xf32, #tpu.memory_space<vmem>>, vector<8x128xf32>
    tpu.vector_store %arg9[%c0_29, %c0_30], %90 {strides = array<i32>} : memref<8x128xf32, #tpu.memory_space<vmem>>, vector<8x128xf32>,
    return
  }
  func.func @transform_0(%arg0: i32) -> (i32, i32) {
    %c0_i32 = arith.constant 0 : i32
    %c0_i32_0 = arith.constant 0 : i32
    return %arg0, %c0_i32 : i32, i32
  }
  func.func @transform_1(%arg0: i32) -> (i32, i32) {
    %c0_i32 = arith.constant 0 : i32
    %c0_i32_0 = arith.constant 0 : i32
    %c0_i32_1 = arith.constant 0 : i32
    return %c0_i32, %c0_i32_0 : i32, i32
  }
  func.func @transform_2(%arg0: i32) -> (i32, i32) {
    %c0_i32 = arith.constant 0 : i32
    %c0_i32_0 = arith.constant 0 : i32
    %c0_i32_1 = arith.constant 0 : i32
    return %c0_i32, %c0_i32_0 : i32, i32
  }
  func.func @transform_3(%arg0: i32) -> (i32, i32) {
    %c0_i32 = arith.constant 0 : i32
    %c0_i32_0 = arith.constant 0 : i32
    %c0_i32_1 = arith.constant 0 : i32
    return %c0_i32, %c0_i32_0 : i32, i32
  }
  func.func @transform_4(%arg0: i32) -> (i32, i32) {
    %c0_i32 = arith.constant 0 : i32
    %c0_i32_0 = arith.constant 0 : i32
    %c0_i32_1 = arith.constant 0 : i32
    return %c0_i32, %c0_i32_0 : i32, i32
  }
  func.func @transform_5(%arg0: i32) -> i32 {
    %c0_i32 = arith.constant 0 : i32
    %c0_i32_0 = arith.constant 0 : i32
    return %c0_i32 : i32
  }
  func.func @transform_6(%arg0: i32) -> i32 {
    %c0_i32 = arith.constant 0 : i32
    %c0_i32_0 = arith.constant 0 : i32
    return %c0_i32 : i32
  }
  func.func @transform_7(%arg0: i32) -> i32 {
    %c0_i32 = arith.constant 0 : i32
    %c0_i32_0 = arith.constant 0 : i32
    return %c0_i32 : i32
  }
  func.func @transform_8(%arg0: i32) -> (i32, i32) {
    %c0_i32 = arith.constant 0 : i32
    %c0_i32_0 = arith.constant 0 : i32
    return %arg0, %c0_i32 : i32, i32
  }
}

</mosaic_0001>

<bundles_post_ra>
// kernel: tpu_custom_call.1
= control target key start
LH: loop header
LB: loop body
LE: loop exit
PB: predicated region body
PF: predicated region fallthrough
CT: control target
= control target key end

     0   :  { %13 = vsyncpa [#allocation3], 0  ;;  %s619_s0 = inlined_call_operand.hbm [shape: f32[8,16], index: 0, kind: input, shape index: {}]   ;;  %s620_s1 = inlined_call_operand.hbm [shape: f32[16,128], index: 1, kind: input, shape index: {}]   ;;  %s621_s2 = inlined_call_operand.vmem [shape: f32[1,128], index: 2, kind: input, shape index: {}]   ;;  %s622_s3 = inlined_call_operand.hbm [shape: f32[128,128], index: 3, kind: input, shape index: {}]   ;;  %s623_s4 = inlined_call_operand.vmem [shape: f32[1,128], index: 4, kind: input, shape index: {}]   ;;  %s624_s5 = inlined_call_operand.vmem [shape: f32[10], index: 5, kind: input, shape index: {}]   ;;  %s625_s6 = inlined_call_operand.vmem [shape: f32[9], index: 6, kind: input, shape index: {}]   ;;  %s626_s7 = inlined_call_operand.vmem [shape: f32[9], index: 7, kind: input, shape index: {}]   ;;  %s627_s8 = inlined_call_operand.hbm [shape: f32[8,128], index: 8, kind: output, shape index: {}]  }
   0x1   :  { %14 = vsyncpa [#allocation7], 0 }
   0x2   :  { %15 = vsyncpa [#allocation5], 0 }
   0x3   :  { %16 = vsyncpa [#allocation11], 0  ;;  %s33_s29 = sshll.u32 %s620_s1, 4  ;;  %s34_s29 = int_to_ptr.hbm [resolvable:$true] %s33_s29 }
   0x4   :  { %17 = vsyncpa [#allocation4], 0  ;;  %s460_s30 = smov [#allocation6]   ;;  %s73_s12 = sshll.u32 %s625_s6, 4  ;;  %s74_s12 = int_to_ptr.vmem [resolvable:$true] %s73_s12 }
   0x5   :  { %s35_s9 = sshll.u32 %s460_s30, 4  ;;  %s461_s13 = smov 128   ;;  %s36_s9 = int_to_ptr.vmem [resolvable:$true] %s35_s9 }
   0x6   :  { %s462_s14 = smov 8   ;;  %s463_s15 = smov [#allocation10]  }
   0x7   :  { %41 = dma.hbm_to_vmem [thread:$0]  %s34_s29, 256, %s36_s9, [#allocation7], %s461_s13, %s461_s13, %s462_s14  }
   0x8   :  { %76 = dma.vmem_to_smem %s74_s12, 16, %s463_s15, [#allocation11]  }
   0x9   :  { %s23_s18 = sshll.u32 %s619_s0, 4  ;;  %s464_s1 = smov [#allocation2]   ;;  %s24_s18 = int_to_ptr.hbm [resolvable:$true] %s23_s18 }
   0xa   :  { %s25_s19 = sshll.u32 %s464_s1, 4  ;;  %s48_s22 = sshll.u32 %s622_s3, 4  ;;  %s26_s19 = int_to_ptr.vmem [resolvable:$true] %s25_s19  ;;  %s49_s22 = int_to_ptr.hbm [resolvable:$true] %s48_s22 }
   0xb   :  { %28 = dma.hbm_to_vmem [thread:$0]  %s24_s18, 128, %s26_s19, [#allocation3]  }
   0xc   :  { %s465_s6 = smov [#allocation8]   ;;  %s64_s26 = sshll.u32 %s624_s5, 4  ;;  %s65_s26 = int_to_ptr.vmem [resolvable:$true] %s64_s26 }
   0xd   :  { %s50_s23 = sshll.u32 %s465_s6, 4  ;;  %s82_s28 = sshll.u32 %s626_s7, 4  ;;  %s51_s23 = int_to_ptr.vmem [resolvable:$true] %s50_s23  ;;  %s83_s28 = int_to_ptr.vmem [resolvable:$true] %s82_s28 }
   0xe   :  { %56 = dma.hbm_to_vmem [thread:$0]  %s49_s22, 2048, %s51_s23, [#allocation7], %s461_s13, %s461_s13, %s462_s14  }
   0xf   :  { %s466_s29 = smov [#allocation9]   ;;  %s467_s30 = smov [#allocation12]  }
  0x10   :  { %67 = dma.vmem_to_smem %s65_s26, 16, %s466_s29, [#allocation5]  }
  0x11   :  { %85 = dma.vmem_to_smem %s83_s28, 16, %s467_s30, [#allocation11]  }
  0x12   :  { %450 = dma.done.wait [#allocation3], 128  }
  0x13   :  { %451 = vsyncadd [#allocation3], 4294967168 }
  0x14   :  { %452 = dma.done.wait [#allocation7], 2304  }
  0x15   :  { %453 = vsyncadd [#allocation7], 4294964992 }
  0x16   :  { %454 = dma.done.wait [#allocation5], 16  }
  0x17   :  { %455 = vsyncadd [#allocation5], 4294967280 }
  0x18   :  { %456 = dma.done.wait [#allocation11], 32  }
  0x19   :  { %457 = vsyncadd [#allocation11], 4294967264 }
  0x1a   :  { %110 = sfence }
  0x1b   :  { %v113_v0 = vld [vmem:[#allocation6 + $0x8] sm:$0xff]  ;;  %v112_v1 = vld [vmem:[#allocation6] sm:$0xff]  ;;  %v111_v2 = vld [vmem:[#allocation2] sm:$0xff]  ;;  %vm118_vm0 = vcmask 130048   ;;  %s532_s3 = sld [smem:[#allocation10]] }
  0x1c   :  { %136 = vmatpush.msra.mxu0 %v113_v0  ;;  %v236_v3 = vld [vmem:[#allocation8 + $0x78] sm:$0xff]  ;;  %v235_v4 = vld [vmem:[#allocation8 + $0x70] sm:$0xff]  ;;  %v234_v5 = vld [vmem:[#allocation8 + $0x68] sm:$0xff]  ;;  %s534_s5 = sld [smem:[#allocation12]] }
  0x1d   :  { %241 = vmatpush.msra.mxu1 %v236_v3  ;;  %v233_v6 = vld [vmem:[#allocation8 + $0x60] sm:$0xff]  ;;  %v232_v7 = vld [vmem:[#allocation8 + $0x58] sm:$0xff]  ;;  %v231_v8 = vld [vmem:[#allocation8 + $0x50] sm:$0xff]  ;;  %s536_s7 = sld [smem:[#allocation9 + $0x1]] }
  0x1e   :  { %137 = vmatpush.msra.mxu0 %v112_v1  ;;  %v230_v9 = vld [vmem:[#allocation8 + $0x48] sm:$0xff]  ;;  %v229_v10 = vld [vmem:[#allocation8 + $0x40] sm:$0xff]  ;;  %v228_v11 = vld [vmem:[#allocation8 + $0x38] sm:$0xff]  ;;  %s538_s9 = sld [smem:[#allocation10 + $0x1]] }
  0x1f   :  { %282 = vmatmul.msk.f32.vlgmr.msra.gmra.mxu0 %vm118_vm0, %v111_v2  ;;  %242 = vmatpush.msra.mxu1 %v235_v4  ;;  %v227_v12 = vld [vmem:[#allocation8 + $0x30] sm:$0xff]  ;;  %v226_v13 = vld [vmem:[#allocation8 + $0x28] sm:$0xff]  ;;  %v225_v14 = vld [vmem:[#allocation8 + $0x20] sm:$0xff]  ;;  %s540_s10 = sld [smem:[#allocation12 + $0x1]] }
  0x20   :  { %v224_v15 = vld [vmem:[#allocation8 + $0x18] sm:$0xff]  ;;  %v223_v16 = vld [vmem:[#allocation8 + $0x10] sm:$0xff]  ;;  %v222_v17 = vld [vmem:[#allocation8 + $0x8] sm:$0xff]  ;;  %s542_s11 = sld [smem:[#allocation9 + $0x2]] }
  0x21   :  { %243 = vmatpush.msra.mxu1 %v234_v5  ;;  %v221_v18 = vld [vmem:[#allocation8] sm:$0xff]  ;;  %s544_s12 = sld [smem:[#allocation10 + $0x2]]  ;;  %v316_v19 = vld [vmem:[%s621_s2] ss:$0 sm:$0xff]  ;;  %v143_v20 = vstv %s532_s3 }
  0x22   :  { %s546_s13 = sld [smem:[#allocation12 + $0x2]]  ;;  %v145_v21 = vstv %s534_s5  ;;  %v317_v3 = vld [vmem:[%s623_s4] ss:$0 sm:$0xff]  ;;  %s468_s5 = smov [#allocation13]  }
  0x23   :  { %244 = vmatpush.msra.mxu1 %v233_v6  ;;  %s548_s14 = sld [smem:[#allocation9 + $0x3]]  ;;  %v147_v22 = vstv %s536_s7  ;;  %s267_s7 = sshll.u32 %s468_s5, 4  ;;  %s268_s7 = int_to_ptr.vmem [resolvable:$true] %s267_s7 }
  0x24   :  { %s550_s15 = sld [smem:[#allocation10 + $0x3]]  ;;  %v150_v27 = vstv %s538_s9 }
  0x25   :  { %245 = vmatpush.msra.mxu1 %v232_v7  ;;  %s552_s16 = sld [smem:[#allocation12 + $0x3]]  ;;  %v153_v28 = vstv %s540_s10 }
  0x26   :  { %s554_s17 = sld [smem:[#allocation9 + $0x4]]  ;;  %v156_v23 = vstv %s542_s11  ;;  %s269_s11 = sshll.u32 %s627_s8, 4  ;;  %s270_s11 = int_to_ptr.hbm [resolvable:$true] %s269_s11 }
  0x27   :  { %246 = vmatpush.msra.mxu1 %v231_v8  ;;  %s556_s18 = sld [smem:[#allocation10 + $0x4]]  ;;  %v159_v32 = vstv %s544_s12 }
  0x28   :  { %s558_s1 = sld [smem:[#allocation12 + $0x4]]  ;;  %v162_v33 = vstv %s546_s13 }
  0x29   :  { %247 = vmatpush.msra.mxu1 %v230_v9  ;;  %s560_s19 = sld [smem:[#allocation9 + $0x5]]  ;;  %v165_v24 = vstv %s548_s14 }
  0x2a   :  { %s562_s20 = sld [smem:[#allocation10 + $0x5]]  ;;  %v168_v35 = vstv %s550_s15 }
  0x2b   :  { %248 = vmatpush.msra.mxu1 %v229_v10  ;;  %s564_s21 = sld [smem:[#allocation9 + $0x6]]  ;;  %v171_v36 = vstv %s552_s16 }
  0x2c   :  { %s566_s22 = sld [smem:[#allocation9 + $0x7]]  ;;  %v174_v25 = vstv %s554_s17 }
  0x2d   :  { %249 = vmatpush.msra.mxu1 %v228_v11  ;;  %s568_s6 = sld [smem:[#allocation9 + $0x8]]  ;;  %v177_v37 = vstv %s556_s18 }
  0x2e   :  { %s570_s23 = sld [smem:[#allocation12 + $0x5]]  ;;  %v180_v39 = vstv %s558_s1 }
  0x2f   :  { %250 = vmatpush.msra.mxu1 %v227_v12  ;;  %s572_s24 = sld [smem:[#allocation10 + $0x6]]  ;;  %v183_v29 = vstv %s560_s19 }
  0x30   :  { %s577_s0 = sld [smem:[#allocation12 + $0x6]]  ;;  %v186_v40 = vstv %s562_s20 }
  0x31   :  { %251 = vmatpush.msra.mxu1 %v226_v13  ;;  %s581_s27 = sld [smem:[#allocation10 + $0x7]]  ;;  %v192_v30 = vstv %s564_s21 }
  0x32   :  { %s587_s28 = sld [smem:[#allocation12 + $0x7]]  ;;  %v201_v34 = vstv %s566_s22 }
  0x33   :  { %252 = vmatpush.msra.mxu1 %v225_v14  ;;  %s593_s2 = sld [smem:[#allocation10 + $0x8]]  ;;  %v210_v38 = vstv %s568_s6 }
  0x34   :  { %s602_s29 = sld [smem:[#allocation12 + $0x8]]  ;;  %v189_v43 = vstv %s570_s23 }
  0x35   :  { %253 = vmatpush.msra.mxu1 %v224_v15  ;;  %v195_v44 = vstv %s572_s24 }
  0x36   :  { %v198_v47 = vstv %s577_s0 }
  0x37   :  { %254 = vmatpush.msra.mxu1 %v223_v16  ;;  %v204_v50 = vstv %s581_s27 }
  0x38   :  { %v207_v53 = vstv %s587_s28 }
  0x39   :  { %255 = vmatpush.msra.mxu1 %v222_v17  ;;  %v213_v56 = vstv %s593_s2 }
  0x3a   :  { %v216_v61 = vstv %s602_s29 }
  0x3b   :  { %256 = vmatpush.msra.mxu1 %v221_v18 }
  0x9c   :  { %v139_v26 = vpop.f32.mrf.mxu0 }
  0x9d   :  { %v140_v31 = vadd.f32 %v316_v19, %v139_v26 }
  0x9f   :  { %vm148_vm1 = vcmp.lt.f32.partialorder %v147_v22, %v140_v31  ;;  %vm157_vm2 = vcmp.lt.f32.partialorder %v156_v23, %v140_v31  ;;  %vm166_vm3 = vcmp.lt.f32.partialorder %v165_v24, %v140_v31  ;;  %vm175_vm4 = vcmp.lt.f32.partialorder %v174_v25, %v140_v31 }
  0xa0   :  { %v151_v41 = vsel %vm148_vm1, %v150_v27, %v143_v20  ;;  %v154_v42 = vsel %vm148_vm1, %v153_v28, %v145_v21  ;;  %vm184_vm5 = vcmp.lt.f32.partialorder %v183_v29, %v140_v31  ;;  %vm193_vm6 = vcmp.lt.f32.partialorder %v192_v30, %v140_v31 }
  0xa1   :  { %v160_v45 = vsel %vm157_vm2, %v159_v32, %v151_v41  ;;  %v163_v46 = vsel %vm157_vm2, %v162_v33, %v154_v42  ;;  %vm202_vm7 = vcmp.lt.f32.partialorder %v201_v34, %v140_v31  ;;  %vm211_vm8 = vcmp.lt.f32.partialorder %v210_v38, %v140_v31 }
  0xa2   :  { %v169_v48 = vsel %vm166_vm3, %v168_v35, %v160_v45  ;;  %v172_v49 = vsel %vm166_vm3, %v171_v36, %v163_v46 }
  0xa3   :  { %v178_v51 = vsel %vm175_vm4, %v177_v37, %v169_v48  ;;  %v181_v52 = vsel %vm175_vm4, %v180_v39, %v172_v49 }
  0xa4   :  { %v187_v54 = vsel %vm184_vm5, %v186_v40, %v178_v51  ;;  %v190_v55 = vsel %vm184_vm5, %v189_v43, %v181_v52 }
  0xa5   :  { %v196_v57 = vsel %vm193_vm6, %v195_v44, %v187_v54  ;;  %v199_v58 = vsel %vm193_vm6, %v198_v47, %v190_v55 }
  0xa6   :  { %v205_v59 = vsel %vm202_vm7, %v204_v50, %v196_v57  ;;  %v208_v60 = vsel %vm202_vm7, %v207_v53, %v199_v58 }
  0xa7   :  { %v214_v62 = vsel %vm211_vm8, %v213_v56, %v205_v59  ;;  %v217_v0 = vsel %vm211_vm8, %v216_v61, %v208_v60 }
  0xa8   :  { %v218_v63 = vmul.f32 %v214_v62, %v140_v31 }
  0xaa   :  { %v219_v1 = vadd.f32 %v218_v63, %v217_v0 }
  0xac   :  { %v220_v2 = vmax.f32 %v219_v1, 0.0 }
  0xae   :  { %257 = vmatmul.f32.vlgmr.msra.gmra.mxu1 %v220_v2 }
 0x12b   :  { %v258_v4 = vpop.f32.mrf.mxu1 }
 0x12c   :  { %v259_v5 = vadd.f32 %v317_v3, %v258_v4 }
 0x12e   :  { %261 = vst [vmem:[#allocation13] sm:$0xff] %v259_v5 }
 0x12f   :  { %272 = dma.vmem_to_hbm [thread:$0]  %s268_s7, 128, %s270_s11, [#allocation4]  }
 0x130   :  { %458 = dma.done.wait [#allocation4], 128  }
 0x131   :  { %459 = vsyncadd [#allocation4], 4294967168 }
 0x132   :  { %277 = vsyncpa [#allocation3], 1 }
 0x133   :  { %278 = vsyncpa [#allocation7], 1 }
 0x134   :  { %279 = vsyncpa [#allocation4], 1 }
 0x135   :  { %280 = vsyncpa [#allocation5], 1 }
 0x136   :  { %281 = vsyncpa [#allocation11], 1 }

</bundles_post_ra>
